<compile_context>
chip_gen: v7x
topology: tpu7x:2x2x1
jax: 0.10.0
libtpu: 0.0.40
codegen_flags: <defaults>
</compile_context>

<pallas_src>
import functools
import math

import numpy as np
import jax
import jax.numpy as jnp
from jax.experimental import pallas as pl
from jax.experimental.pallas import tpu as pltpu


def _lsq_weight_kernel(scale_ref, x_ref, o_ref, *, valmin, valmax, skip_bit):
    """Elementwise LSQ fake-quant on one (tr, block_cols) tile."""
    s = scale_ref[0]                                  # scalar scale from SMEM
    x = x_ref[...].astype(jnp.float32)

    # True division (bit-exact vs torch.div / the JAX reference); hidden under DMA.
    x_clip = jnp.clip(x / s, valmin, valmax)          # F.hardtanh(min_val, max_val)
    x_round = jnp.round(x_clip)                       # round-half-to-even == torch.round

    if skip_bit:                                      # static Python flag
        # After clip+round the values are exact small integers -> clear the low
        # `skip_bit` bits of the magnitude with integer shifts (exact, cheap).
        v = x_round.astype(jnp.int32)
        mag = jnp.abs(v)
        mag = (mag >> skip_bit) << skip_bit
        v = jnp.where(v < 0, -mag, mag)
        x_round = v.astype(jnp.float32)

    o_ref[...] = (x_round * s).astype(o_ref.dtype)


@functools.partial(
    jax.jit,
    static_argnames=(
        "valmin", "valmax", "skip_bit", "block_rows", "block_cols",
        "core_parallel", "alias_input",
    ),
)
def _lsq_weight_impl(x, scale, *, valmin, valmax, skip_bit,
                     block_rows, block_cols, core_parallel, alias_input):
    orig_shape = x.shape
    orig_dtype = x.dtype
    n = math.prod(orig_shape)

    # Lane-dense slab: flatten and view as (-1, block_cols).  Pad with at most
    # block_cols-1 zeros, and only when n is not lane-aligned; on the aligned
    # path every reshape here is metadata-only under jit (no extra HBM traffic
    # outside the kernel).
    num_rows = pl.cdiv(n, block_cols)
    n_pad = num_rows * block_cols
    flat = x.reshape(-1)
    if n_pad != n:
        flat = jnp.pad(flat, (0, n_pad - n))
    x2d = flat.reshape(num_rows, block_cols)

    # Row tile: whole array if small, else a multiple-of-8 row block (4 MiB f32
    # at the defaults -> ~16 MiB with in+out double buffering, VMEM-safe on
    # v5e/v6e/v7x).  Last grid step may be ragged; Pallas masks the edge block.
    if num_rows <= block_rows:
        tr = num_rows
        grid = (1,)
    else:
        tr = max(8, (block_rows // 8) * 8)
        grid = (pl.cdiv(num_rows, tr),)

    kernel = functools.partial(
        _lsq_weight_kernel, valmin=valmin, valmax=valmax, skip_bit=skip_bit
    )

    # v7x: CORE_PARALLEL genuinely shards the grid across the 2 TensorCores;
    # on single-TC chips (v5e/v6e) keep the plain "parallel" semantics.
    dim_sem = (pltpu.CORE_PARALLEL,) if core_parallel else ("parallel",)

    itemsize = jnp.dtype(orig_dtype).itemsize
    out2d = pl.pallas_call(
        kernel,
        out_shape=jax.ShapeDtypeStruct((num_rows, block_cols), orig_dtype),
        grid=grid,
        in_specs=[
            pl.BlockSpec(memory_space=pltpu.MemorySpace.SMEM),       # scalar scale
            pl.BlockSpec((tr, block_cols), lambda i: (i, 0)),        # tiled input
        ],
        out_specs=pl.BlockSpec((tr, block_cols), lambda i: (i, 0)),  # tiled output
        compiler_params=pltpu.CompilerParams(dimension_semantics=dim_sem),
        cost_estimate=pl.CostEstimate(
            flops=5 * n, transcendentals=0, bytes_accessed=2 * n * itemsize
        ),
        # Fake-quant is same-shape/same-dtype work: optionally alias the weight
        # slab to the output (use only when the caller donates the buffer).
        input_output_aliases={1: 0} if alias_input else {},
    )(scale, x2d)

    out_flat = out2d.reshape(-1)
    if n_pad != n:
        out_flat = out_flat[:n]
    return out_flat.reshape(orig_shape)


def lsq_weight(x, scale, constraint, skip_bit=None, *,
               block_rows=1024, block_cols=1024,
               core_parallel=False, alias_input=False):
    """Pallas implementation of LsqWeight.forward.

    x:          weight tensor, any shape (e.g. conv weight (O, I, kH, kW))
    scale:      shape (1,) float32 parameter
    constraint: 1-D integer grid (host-side / numpy convertible); only min/max used
    """
    c = np.asarray(constraint)                        # host-side statics, jit-safe
    return _lsq_weight_impl(
        x, scale,
        valmin=float(c.min()), valmax=float(c.max()),
        skip_bit=skip_bit,
        block_rows=int(block_rows), block_cols=int(block_cols),
        core_parallel=bool(core_parallel), alias_input=bool(alias_input),
    )


def _reference(x, scale, constraint, skip_bit=None):
    """Pure-JAX reference mirroring the PyTorch forward."""
    c = np.asarray(constraint)
    valmin = float(c.min())
    valmax = float(c.max())
    s = scale[0]
    x_round = jnp.round(jnp.clip(x / s, valmin, valmax))
    if skip_bit:
        sign = jnp.sign(x_round)
        step = float(2 ** skip_bit)
        x_round = jnp.floor(jnp.abs(x_round) / step) * step * sign
    return x_round * s


if __name__ == "__main__":
    key = jax.random.PRNGKey(0)

    # 4-bit signed constraint grid, as typically passed to LsqWeight.
    constraint = np.arange(-8, 8, dtype=np.int32)     # valmin=-8, valmax=7

    # Conv-weight-like input (O=32, I=16, kH=3, kW=3), PyTorch OIHW convention.
    # 4608 elements -> exercises the (tiny) lane-padding path.
    x = jax.random.normal(key, (32, 16, 3, 3), dtype=jnp.float32)

    # scale parameter: nn.Parameter(torch.ones(1)) by default (use 0.25 here).
    scale = jnp.ones((1,), dtype=jnp.float32) * 0.25

    out = lsq_weight(x, scale, constraint, skip_bit=None)
    out = jax.block_until_ready(out)

    ref = _reference(x, scale, constraint, skip_bit=None)
    assert out.shape == x.shape and out.dtype == x.dtype
    assert jnp.allclose(out, ref, atol=1e-6), "mismatch vs reference"

    # Exercise skip_bit, the zero-copy lane-aligned path (36864 = 36*1024),
    # the multi-block grid and a ragged last row-block (36 rows, tr=8, grid=5).
    key2 = jax.random.PRNGKey(1)
    x2 = jax.random.normal(key2, (64, 64, 3, 3), dtype=jnp.float32)
    out_sb = jax.block_until_ready(
        lsq_weight(x2, scale, constraint, skip_bit=1, block_rows=8)
    )
    ref_sb = _reference(x2, scale, constraint, skip_bit=1)
    assert jnp.allclose(out_sb, ref_sb, atol=1e-6), "mismatch vs reference (skip_bit)"

    print("KERNEL_OK")
</pallas_src>

<mosaic_0001>
module attributes {stable_mosaic.version = 11 : i64} {
  func.func @_lsq_weight_kernel(%arg0: i32, %arg1: memref<1xf32, #tpu.memory_space<smem>>, %arg2: memref<5x1024xf32, #tpu.memory_space<vmem>>, %arg3: memref<5x1024xf32, #tpu.memory_space<vmem>>) attributes {dimension_semantics = [#tpu.dimension_semantics<parallel>], iteration_bounds = array<i64: 1>, scalar_prefetch = 0 : i64, scratch_operands = 0 : i64, tpu.core_type = #tpu.core_type<tc>, window_params = [{transform_indices = @transform_0, window_bounds = array<i64: 1>}, {transform_indices = @transform_1, window_bounds = array<i64: 5, 1024>}, {transform_indices = @transform_2, window_bounds = array<i64: 5, 1024>}]} {
    %c0 = arith.constant 0 : index
    %0 = memref.load %arg1[%c0] : memref<1xf32, #tpu.memory_space<smem>>
    %c0_0 = arith.constant 0 : index
    %c0_1 = arith.constant 0 : index
    %1 = vector.load %arg2[%c0_0, %c0_1] : memref<5x1024xf32, #tpu.memory_space<vmem>>, vector<5x1024xf32>
    %2 = vector.broadcast %0 : f32 to vector<5x1024xf32>
    %3 = arith.divf %1, %2 : vector<5x1024xf32>
    %cst = arith.constant -8.000000e+00 : f32
    %cst_2 = arith.constant 7.000000e+00 : f32
    %4 = vector.broadcast %cst : f32 to vector<5x1024xf32>
    %5 = arith.maximumf %4, %3 : vector<5x1024xf32>
    %6 = vector.broadcast %cst_2 : f32 to vector<5x1024xf32>
    %7 = arith.minimumf %6, %5 : vector<5x1024xf32>
    %8 = math.roundeven %7 : vector<5x1024xf32>
    %9 = vector.broadcast %0 : f32 to vector<5x1024xf32>
    %10 = arith.mulf %8, %9 : vector<5x1024xf32>
    %c0_3 = arith.constant 0 : index
    %c0_4 = arith.constant 0 : index
    %11 = vector.load %arg3[%c0_3, %c0_4] : memref<5x1024xf32, #tpu.memory_space<vmem>>, vector<5x1024xf32>
    tpu.vector_store %arg3[%c0_3, %c0_4], %10 {strides = array<i32>} : memref<5x1024xf32, #tpu.memory_space<vmem>>, vector<5x1024xf32>,
    return
  }
  func.func @transform_0(%arg0: i32) -> i32 {
    %c0_i32 = arith.constant 0 : i32
    %c0_i32_0 = arith.constant 0 : i32
    return %c0_i32 : i32
  }
  func.func @transform_1(%arg0: i32) -> (i32, i32) {
    %c0_i32 = arith.constant 0 : i32
    %c0_i32_0 = arith.constant 0 : i32
    return %arg0, %c0_i32 : i32, i32
  }
  func.func @transform_2(%arg0: i32) -> (i32, i32) {
    %c0_i32 = arith.constant 0 : i32
    %c0_i32_0 = arith.constant 0 : i32
    return %arg0, %c0_i32 : i32, i32
  }
}

</mosaic_0001>

<bundles_post_ra>
// kernel: _lsq_weight_impl.1
= control target key start
LH: loop header
LB: loop body
LE: loop exit
PB: predicated region body
PF: predicated region fallthrough
CT: control target
= control target key end

     0   :  { %s151_s0 = inlined_call_operand.<no memory space> [shape: f32[1], index: 0, kind: input, shape index: {}]   ;;  %s152_s1 = inlined_call_operand.vmem [shape: f32[5,1024], index: 1, kind: input, shape index: {}]   ;;  %s153_s2 = inlined_call_operand.vmem [shape: f32[5,1024], index: 2, kind: output, shape index: {}]  }
   0x1   :  { %v21_v0 = vstv %s151_s0  ;;  %v13_v1 = vld [vmem:[%s152_s1] sm:$0x1f]  ;;  %v14_v2 = vld [vmem:[%s152_s1 + $0x8] sm:$0x1f]  ;;  %v15_v3 = vld [vmem:[%s152_s1 + $0x10] sm:$0x1f] }
   0x2   :  { %83 = vrcp.f32 %v21_v0  ;;  %v16_v4 = vld [vmem:[%s152_s1 + $0x18] sm:$0x1f]  ;;  %v17_v5 = vld [vmem:[%s152_s1 + $0x20] sm:$0x1f]  ;;  %v18_v6 = vld [vmem:[%s152_s1 + $0x28] sm:$0x1f] }
   0x3   :  { %v19_v7 = vld [vmem:[%s152_s1 + $0x30] sm:$0x1f]  ;;  %v20_v8 = vld [vmem:[%s152_s1 + $0x38] sm:$0x1f] }
   0xc   :  { %v84_v9 = vpop.eup %83 }
   0xd   :  { %v23_v10 = vmul.f32 %v84_v9, %v13_v1  ;;  %v24_v11 = vmul.f32 %v84_v9, %v14_v2  ;;  %v25_v12 = vmul.f32 %v84_v9, %v15_v3  ;;  %v26_v13 = vmul.f32 %v84_v9, %v16_v4 }
   0xe   :  { %v27_v14 = vmul.f32 %v84_v9, %v17_v5  ;;  %v28_v15 = vmul.f32 %v84_v9, %v18_v6  ;;  %v29_v16 = vmul.f32 %v84_v9, %v19_v7  ;;  %v30_v17 = vmul.f32 %v84_v9, %v20_v8 }
   0xf   :  { %v31_v18 = vmax.f32 %v23_v10, -8.0  ;;  %v32_v19 = vmax.f32 %v24_v11, -8.0  ;;  %v33_v20 = vmax.f32 %v25_v12, -8.0  ;;  %v34_v21 = vmax.f32 %v26_v13, -8.0 }
  0x10   :  { %v35_v22 = vmax.f32 %v27_v14, -8.0  ;;  %v36_v23 = vmax.f32 %v28_v15, -8.0  ;;  %v37_v24 = vmax.f32 %v29_v16, -8.0  ;;  %v38_v25 = vmax.f32 %v30_v17, -8.0 }
  0x11   :  { %v39_v26 = vmin.f32 %v31_v18, 7.0  ;;  %v40_v27 = vmin.f32 %v32_v19, 7.0  ;;  %v41_v28 = vmin.f32 %v33_v20, 7.0  ;;  %v42_v29 = vmin.f32 %v34_v21, 7.0 }
  0x12   :  { %v43_v30 = vmin.f32 %v35_v22, 7.0  ;;  %v44_v31 = vmin.f32 %v36_v23, 7.0  ;;  %v45_v32 = vmin.f32 %v37_v24, 7.0  ;;  %v46_v33 = vmin.f32 %v38_v25, 7.0 }
  0x13   :  { %v75_v34 = vround.rtne.f32 %v39_v26  ;;  %v76_v35 = vround.rtne.f32 %v40_v27  ;;  %v77_v36 = vround.rtne.f32 %v41_v28  ;;  %v78_v37 = vround.rtne.f32 %v42_v29 }
  0x14   :  { %v79_v38 = vround.rtne.f32 %v43_v30  ;;  %v80_v39 = vround.rtne.f32 %v44_v31  ;;  %v81_v40 = vround.rtne.f32 %v45_v32  ;;  %v82_v41 = vround.rtne.f32 %v46_v33 }
  0x15   :  { %v55_v42 = vmul.f32 %v75_v34, %v21_v0  ;;  %v56_v43 = vmul.f32 %v76_v35, %v21_v0  ;;  %v57_v44 = vmul.f32 %v77_v36, %v21_v0  ;;  %v58_v45 = vmul.f32 %v78_v37, %v21_v0 }
  0x16   :  { %v59_v46 = vmul.f32 %v79_v38, %v21_v0  ;;  %v60_v47 = vmul.f32 %v80_v39, %v21_v0  ;;  %v61_v48 = vmul.f32 %v81_v40, %v21_v0  ;;  %v62_v49 = vmul.f32 %v82_v41, %v21_v0 }
  0x17   :  { %63 = vst [vmem:[%s153_s2] sm:$0x1f] %v55_v42  ;;  %64 = vst [vmem:[%s153_s2 + $0x8] sm:$0x1f] %v56_v43 }
  0x18   :  { %65 = vst [vmem:[%s153_s2 + $0x10] sm:$0x1f] %v57_v44  ;;  %66 = vst [vmem:[%s153_s2 + $0x18] sm:$0x1f] %v58_v45 }
  0x19   :  { %67 = vst [vmem:[%s153_s2 + $0x20] sm:$0x1f] %v59_v46  ;;  %68 = vst [vmem:[%s153_s2 + $0x28] sm:$0x1f] %v60_v47 }
  0x1a   :  { %69 = vst [vmem:[%s153_s2 + $0x30] sm:$0x1f] %v61_v48  ;;  %70 = vst [vmem:[%s153_s2 + $0x38] sm:$0x1f] %v62_v49 }

</bundles_post_ra>
